<compile_context>
chip_gen: v7x
topology: tpu7x:2x2x1
jax: 0.10.0
libtpu: 0.0.40
codegen_flags: <defaults>
</compile_context>

<pallas_src>
import jax
import jax.numpy as jnp
from jax.experimental import pallas as pl
from jax.experimental.pallas import tpu as pltpu


def patch_embed_kernel(x_ref, w_ref, b_ref, g_ref, beta_ref, o_ref):
    # x_ref:    (tm, P)   patch rows
    # w_ref:    (P, E)    projection weight (conv weight transposed), resident
    # b_ref:    (1, E)    conv bias (f32), resident
    # g_ref:    (1, E)    LayerNorm gamma (f32), resident
    # beta_ref: (1, E)    LayerNorm beta (f32), resident
    # o_ref:    (tm, E)
    y = jnp.dot(x_ref[...], w_ref[...], preferred_element_type=jnp.float32)
    y = y + b_ref[...]

    # One-pass LayerNorm statistics over the embedding dim (last axis).
    # var = E[y^2] - E[y]^2 ; eps placement matches nn.LayerNorm default.
    inv_e = jnp.float32(1.0 / y.shape[-1])
    s1 = jnp.sum(y, axis=-1, keepdims=True)
    s2 = jnp.sum(y * y, axis=-1, keepdims=True)
    mean = s1 * inv_e
    var = s2 * inv_e - mean * mean
    y_norm = (y - mean) * jax.lax.rsqrt(var + 1e-5)
    out = y_norm * g_ref[...] + beta_ref[...]
    o_ref[...] = out.astype(o_ref.dtype)


def _pick_tiling(M, tm_max):
    """Balanced row tiling.

    Returns (tm, grid, M_pad) with:
      * tm a multiple of 8 (sublane aligned), tm <= max(8, tm_max),
      * grid >= 2 whenever M > 8 (so work splits across v7x's two cores),
      * padding M_pad - M < 8 * grid (avoids the up-to-50% padding the naive
        "largest tile" picker can produce on awkward M).
    """
    if M <= 8:
        return 8, 1, 8
    grid_target = max(pl.cdiv(M, tm_max), 2)
    tm = pl.cdiv(M, grid_target)
    tm = max(8, ((tm + 7) // 8) * 8)          # round up to multiple of 8
    grid = pl.cdiv(M, tm)
    return tm, grid, grid * tm


def patch_embed(x, conv_w, conv_b, ln_gamma, ln_beta, *, patch_size,
                tm=512, out_dtype=None):
    """x: (B, spectrum_dim).  conv_w: (embed_dim, 1, patch_size)."""
    B, L = x.shape
    n_patches = L // patch_size
    E = conv_w.shape[0]
    out_dtype = x.dtype if out_dtype is None else out_dtype

    # Conv1d with stride == kernel drops any trailing remainder of L.
    if L != n_patches * patch_size:
        x = x[:, : n_patches * patch_size]

    # Non-overlapping patches -> rows of a matmul (pure metadata reshape).
    M = B * n_patches
    xp = x.reshape(M, patch_size)
    w = jnp.transpose(conv_w[:, 0, :])          # (patch_size, E)
    b = conv_b.reshape(1, E).astype(jnp.float32)
    g = ln_gamma.reshape(1, E).astype(jnp.float32)
    beta = ln_beta.reshape(1, E).astype(jnp.float32)

    tm_eff, grid, M_pad = _pick_tiling(M, tm)
    if M_pad != M:
        # Zero-pad remainder rows (< 8 per grid step); they compute harmless
        # garbage and are sliced off below.
        xp = jnp.pad(xp, ((0, M_pad - M), (0, 0)))

    out = pl.pallas_call(
        patch_embed_kernel,
        out_shape=jax.ShapeDtypeStruct((M_pad, E), out_dtype),
        grid_spec=pltpu.PrefetchScalarGridSpec(
            num_scalar_prefetch=0,
            grid=(grid,),
            in_specs=[
                pl.BlockSpec((tm_eff, patch_size), lambda i: (i, 0)),
                pl.BlockSpec((patch_size, E), lambda i: (0, 0)),
                pl.BlockSpec((1, E), lambda i: (0, 0)),
                pl.BlockSpec((1, E), lambda i: (0, 0)),
                pl.BlockSpec((1, E), lambda i: (0, 0)),
            ],
            out_specs=pl.BlockSpec((tm_eff, E), lambda i: (i, 0)),
        ),
        compiler_params=pltpu.CompilerParams(
            dimension_semantics=("parallel",)),
    )(xp, w, b, g, beta)

    if M_pad != M:
        out = out[:M]
    return out.reshape(B, n_patches, E)


def patch_embed_ref(x, conv_w, conv_b, ln_gamma, ln_beta, *, patch_size):
    """Plain-JAX reference mirroring the PyTorch forward."""
    B, L = x.shape
    n_patches = L // patch_size
    xp = x[:, : n_patches * patch_size].reshape(B, n_patches, patch_size)
    y = jnp.einsum("bnp,pe->bne", xp, jnp.transpose(conv_w[:, 0, :])) + conv_b
    mean = jnp.mean(y, axis=-1, keepdims=True)
    var = jnp.mean((y - mean) ** 2, axis=-1, keepdims=True)
    return (y - mean) * jax.lax.rsqrt(var + 1e-5) * ln_gamma + ln_beta


if __name__ == "__main__":
    # Small, module-consistent shapes.
    B = 2
    spectrum_dim = 128
    patch_size = 16
    embed_dim = 128
    n_patches = spectrum_dim // patch_size   # 8

    key = jax.random.PRNGKey(0)
    kx, kw, kb, kg, kbt = jax.random.split(key, 5)

    x = jax.random.normal(kx, (B, spectrum_dim), dtype=jnp.float32)
    # Conv1d weight shape (out_channels, in_channels, kernel_size) = (E, 1, P).
    conv_w = jax.random.normal(kw, (embed_dim, 1, patch_size), dtype=jnp.float32) * 0.05
    conv_b = jax.random.normal(kb, (embed_dim,), dtype=jnp.float32) * 0.01
    ln_gamma = 1.0 + 0.1 * jax.random.normal(kg, (embed_dim,), dtype=jnp.float32)
    ln_beta = 0.1 * jax.random.normal(kbt, (embed_dim,), dtype=jnp.float32)

    out = patch_embed(x, conv_w, conv_b, ln_gamma, ln_beta, patch_size=patch_size)
    out = jax.block_until_ready(out)

    ref = patch_embed_ref(x, conv_w, conv_b, ln_gamma, ln_beta, patch_size=patch_size)
    assert out.shape == (B, n_patches, embed_dim)
    assert jnp.allclose(out, ref, atol=1e-4, rtol=1e-4)

    print("KERNEL_OK")
</pallas_src>

<mosaic_0001>
module attributes {stable_mosaic.version = 11 : i64} {
  func.func @patch_embed_kernel(%arg0: i32, %arg1: memref<8x16xf32, #tpu.memory_space<vmem>>, %arg2: memref<16x128xf32, #tpu.memory_space<vmem>>, %arg3: memref<1x128xf32, #tpu.memory_space<vmem>>, %arg4: memref<1x128xf32, #tpu.memory_space<vmem>>, %arg5: memref<1x128xf32, #tpu.memory_space<vmem>>, %arg6: memref<8x128xf32, #tpu.memory_space<vmem>>) attributes {dimension_semantics = [#tpu.dimension_semantics<parallel>], iteration_bounds = array<i64: 2>, scalar_prefetch = 0 : i64, scratch_operands = 0 : i64, tpu.core_type = #tpu.core_type<tc>, window_params = [{transform_indices = @transform_0, window_bounds = array<i64: 8, 16>}, {pipeline_mode = #tpu.pipeline_mode<synchronous>, transform_indices = @transform_1, window_bounds = array<i64: 16, 128>}, {pipeline_mode = #tpu.pipeline_mode<synchronous>, transform_indices = @transform_2, window_bounds = array<i64: 1, 128>}, {pipeline_mode = #tpu.pipeline_mode<synchronous>, transform_indices = @transform_3, window_bounds = array<i64: 1, 128>}, {pipeline_mode = #tpu.pipeline_mode<synchronous>, transform_indices = @transform_4, window_bounds = array<i64: 1, 128>}, {transform_indices = @transform_5, window_bounds = array<i64: 8, 128>}]} {
    %c0 = arith.constant 0 : index
    %c0_0 = arith.constant 0 : index
    %0 = vector.load %arg1[%c0, %c0_0] : memref<8x16xf32, #tpu.memory_space<vmem>>, vector<8x16xf32>
    %c0_1 = arith.constant 0 : index
    %c0_2 = arith.constant 0 : index
    %1 = vector.load %arg2[%c0_1, %c0_2] : memref<16x128xf32, #tpu.memory_space<vmem>>, vector<16x128xf32>
    %cst = arith.constant dense<0.000000e+00> : vector<8x128xf32>
    %2 = tpu.matmul %0, %1, %cst {dimension_numbers = #tpu.dot_dimension_numbers<[1], [0], [0], [1], [0, 0, 1, 1], [], []>} : vector<8x16xf32>, vector<16x128xf32>, vector<8x128xf32> -> vector<8x128xf32>
    %c0_3 = arith.constant 0 : index
    %c0_4 = arith.constant 0 : index
    %3 = vector.load %arg3[%c0_3, %c0_4] : memref<1x128xf32, #tpu.memory_space<vmem>>, vector<1x128xf32>
    %4 = vector.broadcast %3 : vector<1x128xf32> to vector<8x128xf32>
    %5 = arith.addf %2, %4 : vector<8x128xf32>
    %cst_5 = arith.constant dense<0.000000e+00> : vector<8xf32>
    %6 = vector.multi_reduction <add>, %5, %cst_5 [1] : vector<8x128xf32> to vector<8xf32>
    %7 = vector.shape_cast %6 : vector<8xf32> to vector<8x1xf32>
    %8 = arith.mulf %5, %5 : vector<8x128xf32>
    %cst_6 = arith.constant dense<0.000000e+00> : vector<8xf32>
    %9 = vector.multi_reduction <add>, %8, %cst_6 [1] : vector<8x128xf32> to vector<8xf32>
    %10 = vector.shape_cast %9 : vector<8xf32> to vector<8x1xf32>
    %cst_7 = arith.constant 7.812500e-03 : f32
    %11 = vector.broadcast %cst_7 : f32 to vector<8x1xf32>
    %12 = arith.mulf %7, %11 : vector<8x1xf32>
    %cst_8 = arith.constant 7.812500e-03 : f32
    %13 = vector.broadcast %cst_8 : f32 to vector<8x1xf32>
    %14 = arith.mulf %10, %13 : vector<8x1xf32>
    %15 = arith.mulf %12, %12 : vector<8x1xf32>
    %16 = arith.subf %14, %15 : vector<8x1xf32>
    %17 = vector.broadcast %12 : vector<8x1xf32> to vector<8x128xf32>
    %18 = arith.subf %5, %17 : vector<8x128xf32>
    %cst_9 = arith.constant 9.99999974E-6 : f32
    %19 = vector.broadcast %cst_9 : f32 to vector<8x1xf32>
    %20 = arith.addf %16, %19 : vector<8x1xf32>
    %21 = math.rsqrt %20 : vector<8x1xf32>
    %22 = vector.broadcast %21 : vector<8x1xf32> to vector<8x128xf32>
    %23 = arith.mulf %18, %22 : vector<8x128xf32>
    %c0_10 = arith.constant 0 : index
    %c0_11 = arith.constant 0 : index
    %24 = vector.load %arg4[%c0_10, %c0_11] : memref<1x128xf32, #tpu.memory_space<vmem>>, vector<1x128xf32>
    %25 = vector.broadcast %24 : vector<1x128xf32> to vector<8x128xf32>
    %26 = arith.mulf %23, %25 : vector<8x128xf32>
    %c0_12 = arith.constant 0 : index
    %c0_13 = arith.constant 0 : index
    %27 = vector.load %arg5[%c0_12, %c0_13] : memref<1x128xf32, #tpu.memory_space<vmem>>, vector<1x128xf32>
    %28 = vector.broadcast %27 : vector<1x128xf32> to vector<8x128xf32>
    %29 = arith.addf %26, %28 : vector<8x128xf32>
    %c0_14 = arith.constant 0 : index
    %c0_15 = arith.constant 0 : index
    %30 = vector.load %arg6[%c0_14, %c0_15] : memref<8x128xf32, #tpu.memory_space<vmem>>, vector<8x128xf32>
    tpu.vector_store %arg6[%c0_14, %c0_15], %29 {strides = array<i32>} : memref<8x128xf32, #tpu.memory_space<vmem>>, vector<8x128xf32>,
    return
  }
  func.func @transform_0(%arg0: i32) -> (i32, i32) {
    %c0_i32 = arith.constant 0 : i32
    %c0_i32_0 = arith.constant 0 : i32
    return %arg0, %c0_i32 : i32, i32
  }
  func.func @transform_1(%arg0: i32) -> (i32, i32) {
    %c0_i32 = arith.constant 0 : i32
    %c0_i32_0 = arith.constant 0 : i32
    %c0_i32_1 = arith.constant 0 : i32
    return %c0_i32, %c0_i32_0 : i32, i32
  }
  func.func @transform_2(%arg0: i32) -> (i32, i32) {
    %c0_i32 = arith.constant 0 : i32
    %c0_i32_0 = arith.constant 0 : i32
    %c0_i32_1 = arith.constant 0 : i32
    return %c0_i32, %c0_i32_0 : i32, i32
  }
  func.func @transform_3(%arg0: i32) -> (i32, i32) {
    %c0_i32 = arith.constant 0 : i32
    %c0_i32_0 = arith.constant 0 : i32
    %c0_i32_1 = arith.constant 0 : i32
    return %c0_i32, %c0_i32_0 : i32, i32
  }
  func.func @transform_4(%arg0: i32) -> (i32, i32) {
    %c0_i32 = arith.constant 0 : i32
    %c0_i32_0 = arith.constant 0 : i32
    %c0_i32_1 = arith.constant 0 : i32
    return %c0_i32, %c0_i32_0 : i32, i32
  }
  func.func @transform_5(%arg0: i32) -> (i32, i32) {
    %c0_i32 = arith.constant 0 : i32
    %c0_i32_0 = arith.constant 0 : i32
    return %arg0, %c0_i32 : i32, i32
  }
}

</mosaic_0001>

<bundles_post_ra>
// kernel: tpu_custom_call.1
= control target key start
LH: loop header
LB: loop body
LE: loop exit
PB: predicated region body
PF: predicated region fallthrough
CT: control target
= control target key end

     0   :  { %10 = vsyncpa [#allocation3], 0  ;;  %s935_s0 = inlined_call_operand.hbm [shape: f32[16,16], index: 0, kind: input, shape index: {}]   ;;  %s936_s1 = inlined_call_operand.hbm [shape: f32[16,128], index: 1, kind: input, shape index: {}]   ;;  %s937_s2 = inlined_call_operand.vmem [shape: f32[1,128], index: 2, kind: input, shape index: {}]   ;;  %s938_s3 = inlined_call_operand.vmem [shape: f32[1,128], index: 3, kind: input, shape index: {}]   ;;  %s939_s4 = inlined_call_operand.vmem [shape: f32[1,128], index: 4, kind: input, shape index: {}]   ;;  %s940_s5 = inlined_call_operand.hbm [shape: f32[16,128], index: 5, kind: output, shape index: {}]  }
   0x1   :  { %12 = vsyncpa [#allocation3 + $0x1], 0 }
   0x2   :  { %13 = vsyncpa [#allocation6], 0 }
   0x3   :  { %14 = vsyncpa [#allocation4], 0 }
   0x4   :  { %16 = vsyncpa [#allocation4 + $0x1], 0  ;;  %s726_s18 = smov 0   ;;  %s728_s19 = smov 0  }
   0x5   :  { %s730_s20 = smov 0   ;;  %s732_s21 = smov 0  }
   0x6 LB: > { %s747_s22 = sadd.s32 4294967295, %s686_s21   ;;  %s463_s23 = sadd.s32 4294967294, %s686_s21   ;;  %s686_s21 = sphi %s732_s21, %s960_s21   ;;  %s682_s20 = sphi %s730_s20, %s959_s20   ;;  %s678_s19 = sphi %s728_s19, %s958_s19   ;;  %s674_s18 = sphi %s726_s18, %s957_s18  }
   0x7   : > { %p42_p0 = scmp.ne.s32.totalorder %s678_s19, %s674_s18  ;;  %p941_p1 = scmp.eq.s32.totalorder %s747_s22, 0 }
   0x8   : > { %p156_p3 = scmp.eq.s32.totalorder %s463_s23, 1  ;;  %p464_p5 = scmp.ge.s32.totalorder %s686_s21, 1 }
   0x9   : > { %p756_p4 = por %p941_p1, %p42_p0  ;;  %p163_p7 = scmp.lt.s32.totalorder %s686_s21, 3 }
   0xa   : > { %p761_p6 = por %p156_p3, %p42_p0  ;;  %s688_s27 = smov [#allocation5]  }
   0xb   : > { %s944_s24 = scalar_select %p756_p4, 1, 0 }
   0xc   : > { %s945_s25 = scalar_select %p761_p6, 1, 0 }
   0xd   : > { %p766_p8 = pnand %p464_p5, %p163_p7  ;;  %s175_s28 = sshll.u32 %s688_s27, 4  ;;  %s770_s28 = int_to_ptr.vmem [resolvable:$true] %s175_s28 }
   0xe   : > { %s782_s30 = sadd.s32 1, %s686_s21   ;;  %s29_s6 = sadd.s32 1, %s682_s20 }
   0xf   : > { %s946_s26 = scalar_select %p766_p8, 1, 0 }
  0x10   : > { %p502_p9 = pneg %p766_p8  ;;  %s26_s7 = ssub.s32 %s686_s21, %s782_s30 }
  0x11   : > { %s558_s10 = scalar_lea.hbm %s936_s1, 256 }
  0x12   : > { %p777_p11 = pnand %p502_p9, %p941_p1  ;;  %p559_p12 = scmp.ne.s32.totalorder %s936_s1, %s558_s10 }
  0x13   : > { %p565_p5 = scmp.lt.u32.totalorder %s558_s10, %s936_s1 }
  0x14   : > { %p560_p13 = pneg %p777_p11 }
  0x16   : > { %p561_p0 = pnand %p560_p13, %p559_p12 }
  0x18   : > { %p562_p3 = pneg %p561_p0 }
  0x1a   : > { %p567_p7 = pnand %p565_p5, %p562_p3 }
  0x1c   : > { %570 = shalt.err (!%p567_p7)
}
  0x1d   : > { %s571_s15 = scalar_lea.vmem %s770_s28, 256  ;;  %p579_p2 = scmp.lt.s32.totalorder %s770_s28, %s770_s28 }
  0x1e   : > { %p572_p9 = scmp.ne.s32.totalorder %s770_s28, %s571_s15  ;;  %p580_p6 = scmp.lt.s32.totalorder %s571_s15, %s571_s15 }
  0x20   : > { %p574_p10 = pnand %p572_p9, %p560_p13  ;;  %p581_p4 = por %p580_p6, %p579_p2 }
  0x22   : > { %p575_p1 = pneg %p574_p10 }
  0x24   : > { %p582_p8 = pnand %p581_p4, %p575_p1 }
  0x26   : > { %585 = shalt.err (!%p582_p8)
}
  0x27   : > { %s689_s16 = smov 128   ;;  %s690_s17 = smov 8  }
  0x28   : > { %505 = dma.hbm_to_vmem [thread:$0]  (!%p777_p11), %s936_s1, 256, %s770_s28, [#allocation6], %s689_s16, %s689_s16, %s690_s17  }
  0x29   : > { %p27_p2 = scmp.eq.s32.totalorder %s26_s7, 0  ;;  %p36_p1 = scmp.ne.s32.totalorder %s682_s20, %s678_s19 }
  0x2a   : > { %p37_p4 = scmp.eq.s32.totalorder %s686_s21, 0  ;;  %p515_p6 = scmp.lt.s32.totalorder %s686_s21, 2 }
  0x2b   : > { %s813_s8 = scalar_select %p27_p2, %s682_s20, %s29_s6  }
  0x2c   : > { %p38_p8 = por %p37_p4, %p36_p1  ;;  %p948_p10 = scmp.eq.s32.totalorder %s747_s22, 1 }
  0x2d   : > { %s198_s10 = sand.u32 1, %s682_s20   ;;  %s468_s11 = sshll.u32 %s686_s21, 7 }
  0x2e   : > { %p817_p12 = por %p948_p10, %p36_p1  ;;  %s467_s12 = sshll.u32 %s198_s10, 3 }
  0x2f   : > { %s826_s14 = scalar_lea.hbm %s935_s0, %s468_s11  ;;  %s202_s28 = scalar_lea.vmem [#allocation2], %s467_s12 }
  0x30   : > { %s209_s6 = sshll.u32 %s202_s28, 4  ;;  %p828_p11 = pnand %p515_p6, %p38_p8  ;;  %s832_s6 = int_to_ptr.vmem [resolvable:$true] %s209_s6 }
  0x31   : > { %s199_s15 = scalar_lea.sflag [#allocation3], %s198_s10  ;;  %s586_s16 = scalar_lea.hbm %s826_s14, 128 }
  0x32   : > { %p587_p13 = scmp.ne.s32.totalorder %s826_s14, %s586_s16  ;;  %p588_p0 = pneg %p828_p11 }
  0x33   : > { %s591_s27 = scalar_lea.hbm %s935_s0, 256  ;;  %p592_p7 = scmp.lt.u32.totalorder %s826_s14, %s935_s0 }
  0x34   : > { %p589_p3 = pnand %p588_p0, %p587_p13  ;;  %p593_p9 = scmp.lt.u32.totalorder %s591_s27, %s586_s16 }
  0x35   : > { %p595_p1 = scmp.lt.u32.totalorder %s586_s16, %s826_s14 }
  0x36   : > { %p590_p5 = pneg %p589_p3  ;;  %p594_p2 = por %p593_p9, %p592_p7 }
  0x38   : > { %p596_p4 = por %p595_p1, %p594_p2 }
  0x3a   : > { %p597_p6 = pnand %p596_p4, %p590_p5 }
  0x3c   : > { %600 = shalt.err (!%p597_p6)
}
  0x3d   : > { %s601_s10 = scalar_lea.vmem %s832_s6, 128  ;;  %s691_s29 = smov [#allocation2]  }
  0x3e   : > { %p602_p8 = scmp.ne.s32.totalorder %s832_s6, %s601_s10  ;;  %s606_s13 = sshll.u32 %s691_s29, 4  ;;  %s607_s13 = int_to_ptr.vmem [resolvable:$false] %s606_s13 }
  0x3f   : > { %s608_s28 = scalar_lea.vmem %s607_s13, 256  ;;  %p609_p3 = scmp.lt.s32.totalorder %s832_s6, %s607_s13 }
  0x40   : > { %p604_p10 = pnand %p602_p8, %p588_p0  ;;  %p610_p7 = scmp.lt.s32.totalorder %s608_s28, %s601_s10 }
  0x42   : > { %p605_p13 = pneg %p604_p10  ;;  %p611_p9 = por %p610_p7, %p609_p3 }
  0x44   : > { %p612_p2 = pnand %p611_p9, %p605_p13 }
  0x46   : > { %615 = shalt.err (!%p612_p2)
}
  0x47   : > { %509 = dma.hbm_to_vmem [thread:$0]  (!%p828_p11), %s826_s14, 128, %s832_s6, %s199_s15  }
  0x48   : > { %p951_p5 = scmp.ne.s32.totalorder %s946_s26, 0 }
  0x49   : > { %s862_s16 = sand.u32 (!%p951_p5), 1, %s678_s19   ;;  %p952_p0 = scmp.ne.s32.totalorder (!%p951_p5), %s944_s24, 0 }
  0x4a   : > { %218 = sbr.rel (%p951_p5) target bundleno = 488 (0x1e8), region = 40  ;;  %s470_s17 = sshll.u32 (!%p951_p5), %s862_s16, 3 }
  0x4b   : > { %s221_s23 = scalar_lea.sflag (!%p951_p5), [#allocation3], %s862_s16  ;;  %s224_s27 = scalar_lea.vmem (!%p951_p5), [#allocation2], %s470_s17 }
  0x51   : > { %661 = dma.done.wait (%p952_p0), %s221_s23, 128  }
  0x52   : > { %663 = vsyncadd (%p952_p0), %s221_s23, 4294967168  ;;  %p953_p11 = scmp.eq.s32.totalorder %s747_s22, 0 }
  0x54   : > { %665 = dma.done.wait (%p953_p11), [#allocation6], 256   ;;  %p954_p1 = pmov %p953_p11 }
  0x55   : > { %v692_v0 = vmov 0.0|0.0   ;;  %vm693_vm0 = vmmov 0   ;;  %v694_v1 = vmov 0.0   ;;  %v256_v2 = vld [vmem:[#allocation5] sm:$0xff]  ;;  %v257_v3 = vld [vmem:[#allocation5 + $0x8] sm:$0xff]  ;;  %v255_v5 = vld [vmem:[%s224_s27] sm:$0xff] }
  0x56   : > { %667 = vsyncadd (%p954_p1), [#allocation6], 4294967040  ;;  %491 = vmatprep.subr.bf16.mxu0 %v692_v0  ;;  %488 = vmatprep.mubr.msk.f32.mxu0 %vm693_vm0, %v694_v1  ;;  %v492_v4 = vpack.c.bf16 %v257_v3, %v256_v2  ;;  %vm265_vm1 = vcmask 130048   ;;  %v473_v6 = vld [vmem:[%s937_s2] ss:$0 sm:$0xff]  ;;  %s478_s11 = sshll.u32 %s747_s22, 7 }
  0x57   : > { %v475_v20 = vld [vmem:[%s938_s3] ss:$0 sm:$0xff]  ;;  %s254_s12 = scalar_lea.vmem [#allocation7], %s470_s17  ;;  %s891_s28 = scalar_lea.hbm %s940_s5, %s478_s11 }
  0x58   : > { %493 = vmatpush3.bf16.msra.mxu0 %v492_v4  ;;  %v476_v22 = vld [vmem:[%s939_s4] ss:$0 sm:$0xff]  ;;  %s383_s10 = sshll.u32 %s254_s12, 4  ;;  %s370_s23 = scalar_lea.sflag [#allocation4], %s862_s16  ;;  %s893_s10 = int_to_ptr.vmem [resolvable:$true] %s383_s10 }
  0x59   : > { %s616_s27 = scalar_lea.vmem %s893_s10, 128  ;;  %s695_s22 = smov [#allocation7]  }
  0x5a   : > { %p617_p4 = scmp.ne.s32.totalorder %s893_s10, %s616_s27  ;;  %s620_s17 = sshll.u32 %s695_s22, 4  ;;  %s621_s17 = int_to_ptr.vmem [resolvable:$false] %s620_s17 }
  0x5b   : > { %489 = vmatmul.mubr.msk.f32.vlgmr.msra.gmra.mrb[0].mxu0 %vm265_vm1, %v255_v5  ;;  %s622_s24 = scalar_lea.vmem %s621_s17, 256  ;;  %p623_p10 = scmp.lt.s32.totalorder %s893_s10, %s621_s17 }
  0x5c   : > { %p618_p6 = pnand %p617_p4, %p817_p12  ;;  %p624_p13 = scmp.lt.s32.totalorder %s622_s24, %s616_s27 }
  0x5e   : > { %p619_p8 = pneg %p618_p6  ;;  %p625_p3 = por %p624_p13, %p623_p10 }
  0x60   : > { %p626_p7 = pnand %p625_p3, %p619_p8 }
 0x12e   : > { %v335_v7 = vpop.f32.mrb[0].mxu0 }
 0x12f   : > { %v336_v8 = vadd.f32 %v473_v6, %v335_v7  ;;  %v490_v9 = vpop.f32.mrb[1].mxu0 }
 0x131   : > { %339 = vadd.xlane.f32.xlu0 %v336_v8  ;;  %v341_v10 = vmul.f32 %v336_v8, %v336_v8 }
 0x135   : > { %342 = vadd.xlane.f32.xlu0 %v341_v10 }
 0x1be   : > { %v340_v11 = vpop.xlane.xlu0 %339 }
 0x1bf   : > { %v344_v12 = vmul.f32 0.0078125, %v340_v11 }
 0x1c1   : > { %v346_v14 = vmul.f32 %v344_v12, %v344_v12  ;;  %v348_v18 = vsub.f32 %v336_v8, %v344_v12 }
 0x1c2   : > { %v343_v13 = vpop.xlane.xlu0 %342 }
 0x1c3   : > { %v345_v15 = vmul.f32 0.0078125, %v343_v13 }
 0x1c5   : > { %v347_v16 = vsub.f32 %v345_v15, %v346_v14 }
 0x1c7   : > { %v349_v17 = vadd.f32 1e-05, %v347_v16 }
 0x1c9   : > { %556 = vrsqrt.f32 %v349_v17 }
 0x1d3   : > { %v557_v19 = vpop.eup %556 }
 0x1d4   : > { %v351_v21 = vmul.f32 %v557_v19, %v348_v18 }
 0x1d6   : > { %v359_v23 = vmul.f32 %v475_v20, %v351_v21 }
 0x1d8   : > { %v367_v24 = vadd.f32 %v476_v22, %v359_v23 }
 0x1da   : > { %368 = vst [vmem:[%s254_s12] sm:$0xff] %v367_v24 }
 0x1db   : > { %629 = shalt.err (!%p626_p7)
}
 0x1dc   : > { %s630_s16 = scalar_lea.hbm %s891_s28, 128  ;;  %s634_s6 = scalar_lea.hbm %s940_s5, 256 }
 0x1dd   : > { %p631_p9 = scmp.ne.s32.totalorder %s891_s28, %s630_s16  ;;  %p635_p0 = scmp.lt.u32.totalorder %s891_s28, %s940_s5 }
 0x1de   : > { %p636_p11 = scmp.lt.u32.totalorder %s634_s6, %s630_s16  ;;  %p638_p4 = scmp.lt.u32.totalorder %s630_s16, %s891_s28 }
 0x1df   : > { %p632_p2 = pnand %p631_p9, %p817_p12 }
 0x1e0   : > { %p637_p1 = por %p636_p11, %p635_p0 }
 0x1e1   : > { %p633_p5 = pneg %p632_p2 }
 0x1e2   : > { %p639_p6 = por %p638_p4, %p637_p1 }
 0x1e4   : > { %p640_p8 = pnand %p639_p6, %p633_p5 }
 0x1e6   : > { %643 = shalt.err (!%p640_p8)
}
 0x1e7   : > { %500 = dma.vmem_to_hbm [thread:$0]  (%p817_p12), %s893_s10, 128, %s891_s28, %s370_s23  }
 0x1e8 PF: > { %s395_s11 = sand.u32 1, %s674_s18   ;;  %p955_p10 = scmp.ne.s32.totalorder %s945_s25, 0 }
 0x1e9   : > { %p956_p13 = scmp.ge.s32.totalorder %s686_s21, 2  ;;  %s396_s12 = scalar_lea.sflag [#allocation4], %s395_s11 }
 0x1eb   : > { %p511_p3 = pnand %p956_p13, %p955_p10 }
 0x1ed   : > { %669 = dma.done.wait (!%p511_p3), %s396_s12, 128  }
 0x1ee   : > { %671 = vsyncadd (!%p511_p3), %s396_s12, 4294967168  ;;  %p19_p7 = scmp.ge.s32.totalorder %s782_s30, 4   ;;  %s957_s18 = smov %s678_s19 }
 0x1ef   : > { %s958_s19 = smov %s682_s20  ;;  %s959_s20 = smov %s813_s8 }
 0x1f0   : > { %s960_s21 = smov %s782_s30  ;;  %21 = sbr.rel (!%p19_p7) target bundleno = 6 (0x6), region = 89 }
 0x1f7   :  { %401 = vsyncpa [#allocation3], 1 }
 0x1f8   :  { %403 = vsyncpa [#allocation3 + $0x1], 1 }
 0x1f9   :  { %404 = vsyncpa [#allocation6], 1 }
 0x1fa   :  { %405 = vsyncpa [#allocation4], 1 }
 0x1fb   :  { %407 = vsyncpa [#allocation4 + $0x1], 1 }

</bundles_post_ra>
